<compile_context>
chip_gen: v7x
topology: tpu7x:2x2x1
jax: 0.10.0
libtpu: 0.0.40
codegen_flags: <defaults>
</compile_context>

<pallas_src>
import functools
import math

import jax
import jax.numpy as jnp
from jax import lax
from jax.experimental import pallas as pl
from jax.experimental.pallas import tpu as pltpu

_LANE = 128
_SUBLANE = 8
_MAX_BLOCK_ROWS = 1024   # (1024, 128) f32 block = 512 KiB per buffer


def _i32(v):
    """Python int -> int32 constant with 2^32 wrap-around."""
    v &= 0xFFFFFFFF
    if v >= 1 << 31:
        v -= 1 << 32
    return jnp.int32(v)


def _srl(x, s):
    """Logical right shift for int32 (arithmetic shift + mask)."""
    mask = (1 << (32 - s)) - 1
    return jnp.right_shift(x, s) & _i32(mask)


def _hash32(x):
    """lowbias32 avalanche hash (wrapping int32 arithmetic)."""
    x = x ^ _srl(x, 16)
    x = x * _i32(0x7FEB352D)
    x = x ^ _srl(x, 15)
    x = x * _i32(0x846CA68B)
    x = x ^ _srl(x, 16)
    return x


def _bits_to_unit(bits):
    """int32 random bits -> uniform float32 in [0, 1) via the mantissa trick."""
    mant = _srl(bits, 9) | _i32(0x3F800000)   # float32 in [1, 2)
    return lax.bitcast_convert_type(mant, jnp.float32) - 1.0


def _gaussian_noise_kernel(x_ref, o_ref, *, std, seed, block_rows):
    half = block_rows // 2
    base_row = pl.program_id(0) * block_rows

    # One unique global counter per (u1, u2) pair; each pair produces two
    # normals covering the first / second half of the block respectively.
    row = lax.broadcasted_iota(jnp.int32, (half, _LANE), 0)
    lane = lax.broadcasted_iota(jnp.int32, (half, _LANE), 1)
    idx = (base_row + row) * _LANE + lane

    k1 = (seed * 0x9E3779B9 + 0x85EBCA6B) & 0xFFFFFFFF
    k2 = (seed * 0x9E3779B9 + 0xC2B2AE35) & 0xFFFFFFFF
    u1 = 1.0 - _bits_to_unit(_hash32(idx ^ _i32(k1)))   # (0, 1] -> safe for log
    u2 = _bits_to_unit(_hash32(idx ^ _i32(k2)))         # [0, 1)

    # Box-Muller with std folded into the radius; use both outputs.
    r = jnp.sqrt(jnp.float32(-2.0 * std * std) * jnp.log(u1))
    theta = jnp.float32(2.0 * math.pi) * u2
    z_cos = r * jnp.cos(theta)
    z_sin = r * jnp.sin(theta)

    out_dtype = o_ref.dtype
    o_ref[0:half, :] = (x_ref[0:half, :].astype(jnp.float32) + z_cos).astype(out_dtype)
    o_ref[half:block_rows, :] = (
        x_ref[half:block_rows, :].astype(jnp.float32) + z_sin
    ).astype(out_dtype)


def _round_up(x, m):
    return (x + m - 1) // m * m


def gaussian_noise(x, *, seed=1234, std=0.1, training=True):
    """Pallas implementation of GaussianNoise.forward (identity in eval mode)."""
    if not training:
        return x

    orig_shape = x.shape
    orig_dtype = x.dtype

    flat = x.reshape(-1)
    n = flat.shape[0]

    rows = pl.cdiv(n, _LANE)
    # Block rows: two sublane-aligned halves (multiple of 16), capped for VMEM
    # (fits v7x's smaller VMEM and v5e's 16 MiB scoped default with room to spare).
    block_rows = min(_MAX_BLOCK_ROWS, _round_up(rows, 2 * _SUBLANE))
    rows_padded = _round_up(rows, block_rows)
    padded_n = rows_padded * _LANE

    if padded_n != n:          # only materialize a padded copy when necessary
        flat = jnp.pad(flat, (0, padded_n - n))
    x2d = flat.reshape(rows_padded, _LANE)

    kernel = functools.partial(
        _gaussian_noise_kernel,
        std=float(std),
        seed=int(seed) & 0xFFFFFFFF,
        block_rows=block_rows,
    )

    out2d = pl.pallas_call(
        kernel,
        out_shape=jax.ShapeDtypeStruct((rows_padded, _LANE), orig_dtype),
        grid=(rows_padded // block_rows,),
        in_specs=[pl.BlockSpec((block_rows, _LANE), lambda i: (i, 0))],
        out_specs=pl.BlockSpec((block_rows, _LANE), lambda i: (i, 0)),
        compiler_params=pltpu.CompilerParams(
            dimension_semantics=("parallel",)),
        cost_estimate=pl.CostEstimate(
            flops=12 * padded_n,
            transcendentals=2 * padded_n,
            bytes_accessed=2 * padded_n * x2d.dtype.itemsize),
    )(x2d)

    if padded_n != n:
        out = out2d.reshape(-1)[:n].reshape(orig_shape)
    else:
        out = out2d.reshape(orig_shape)
    return out


if __name__ == "__main__":
    key = jax.random.PRNGKey(0)
    # NCHW activation implied by the module: batch=2, channels=4, 16x16 spatial.
    x = jax.random.normal(key, (2, 4, 16, 16), dtype=jnp.float32)

    y = gaussian_noise(x, seed=1234, std=0.1, training=True)
    y = jax.block_until_ready(y)

    assert y.shape == x.shape and y.dtype == x.dtype
    assert bool(jnp.all(jnp.isfinite(y)))
    noise = y - x
    # Sanity: zero-mean-ish noise with std near 0.1.
    assert abs(float(jnp.mean(noise))) < 0.05
    assert 0.04 < float(jnp.std(noise)) < 0.25

    # Eval mode is the identity, like the PyTorch module.
    y_eval = gaussian_noise(x, training=False)
    assert bool(jnp.all(y_eval == x))

    print("KERNEL_OK")
</pallas_src>

<mosaic_0001>
module attributes {stable_mosaic.version = 11 : i64} {
  func.func @_gaussian_noise_kernel(%arg0: i32, %arg1: memref<16x128xf32, #tpu.memory_space<vmem>>, %arg2: memref<16x128xf32, #tpu.memory_space<vmem>>) attributes {dimension_semantics = [#tpu.dimension_semantics<parallel>], iteration_bounds = array<i64: 1>, scalar_prefetch = 0 : i64, scratch_operands = 0 : i64, tpu.core_type = #tpu.core_type<tc>, window_params = [{transform_indices = @transform_0, window_bounds = array<i64: 16, 128>}, {transform_indices = @transform_1, window_bounds = array<i64: 16, 128>}]} {
    %c16_i32 = arith.constant 16 : i32
    %0 = arith.muli %arg0, %c16_i32 : i32
    %1 = tpu.iota {dimensions = array<i32: 0>} : vector<8x128xi32>
    %2 = tpu.iota {dimensions = array<i32: 1>} : vector<8x128xi32>
    %3 = vector.broadcast %0 : i32 to vector<8x128xi32>
    %4 = arith.addi %3, %1 : vector<8x128xi32>
    %c128_i32 = arith.constant 128 : i32
    %5 = vector.broadcast %c128_i32 : i32 to vector<8x128xi32>
    %6 = arith.muli %4, %5 : vector<8x128xi32>
    %7 = arith.addi %6, %2 : vector<8x128xi32>
    %c760514605_i32 = arith.constant 760514605 : i32
    %8 = vector.broadcast %c760514605_i32 : i32 to vector<8x128xi32>
    %9 = arith.xori %7, %8 : vector<8x128xi32>
    %c16_i32_0 = arith.constant 16 : i32
    %10 = vector.broadcast %c16_i32_0 : i32 to vector<8x128xi32>
    %11 = arith.shrsi %9, %10 : vector<8x128xi32>
    %c65535_i32 = arith.constant 65535 : i32
    %12 = vector.broadcast %c65535_i32 : i32 to vector<8x128xi32>
    %13 = arith.andi %11, %12 : vector<8x128xi32>
    %14 = arith.xori %9, %13 : vector<8x128xi32>
    %c2146121005_i32 = arith.constant 2146121005 : i32
    %15 = vector.broadcast %c2146121005_i32 : i32 to vector<8x128xi32>
    %16 = arith.muli %14, %15 : vector<8x128xi32>
    %c15_i32 = arith.constant 15 : i32
    %17 = vector.broadcast %c15_i32 : i32 to vector<8x128xi32>
    %18 = arith.shrsi %16, %17 : vector<8x128xi32>
    %c131071_i32 = arith.constant 131071 : i32
    %19 = vector.broadcast %c131071_i32 : i32 to vector<8x128xi32>
    %20 = arith.andi %18, %19 : vector<8x128xi32>
    %21 = arith.xori %16, %20 : vector<8x128xi32>
    %c-2073254261_i32 = arith.constant -2073254261 : i32
    %22 = vector.broadcast %c-2073254261_i32 : i32 to vector<8x128xi32>
    %23 = arith.muli %21, %22 : vector<8x128xi32>
    %c16_i32_1 = arith.constant 16 : i32
    %24 = vector.broadcast %c16_i32_1 : i32 to vector<8x128xi32>
    %25 = arith.shrsi %23, %24 : vector<8x128xi32>
    %c65535_i32_2 = arith.constant 65535 : i32
    %26 = vector.broadcast %c65535_i32_2 : i32 to vector<8x128xi32>
    %27 = arith.andi %25, %26 : vector<8x128xi32>
    %28 = arith.xori %23, %27 : vector<8x128xi32>
    %c9_i32 = arith.constant 9 : i32
    %29 = vector.broadcast %c9_i32 : i32 to vector<8x128xi32>
    %30 = arith.shrsi %28, %29 : vector<8x128xi32>
    %c8388607_i32 = arith.constant 8388607 : i32
    %31 = vector.broadcast %c8388607_i32 : i32 to vector<8x128xi32>
    %32 = arith.andi %30, %31 : vector<8x128xi32>
    %c1065353216_i32 = arith.constant 1065353216 : i32
    %33 = vector.broadcast %c1065353216_i32 : i32 to vector<8x128xi32>
    %34 = arith.ori %32, %33 : vector<8x128xi32>
    %35 = tpu.bitcast %34 : vector<8x128xi32> -> vector<8x128xf32>
    %cst = arith.constant 1.000000e+00 : f32
    %36 = vector.broadcast %cst : f32 to vector<8x128xf32>
    %37 = arith.subf %35, %36 : vector<8x128xf32>
    %cst_3 = arith.constant 1.000000e+00 : f32
    %38 = vector.broadcast %cst_3 : f32 to vector<8x128xf32>
    %39 = arith.subf %38, %37 : vector<8x128xf32>
    %c1780182007_i32 = arith.constant 1780182007 : i32
    %40 = vector.broadcast %c1780182007_i32 : i32 to vector<8x128xi32>
    %41 = arith.xori %7, %40 : vector<8x128xi32>
    %c16_i32_4 = arith.constant 16 : i32
    %42 = vector.broadcast %c16_i32_4 : i32 to vector<8x128xi32>
    %43 = arith.shrsi %41, %42 : vector<8x128xi32>
    %c65535_i32_5 = arith.constant 65535 : i32
    %44 = vector.broadcast %c65535_i32_5 : i32 to vector<8x128xi32>
    %45 = arith.andi %43, %44 : vector<8x128xi32>
    %46 = arith.xori %41, %45 : vector<8x128xi32>
    %c2146121005_i32_6 = arith.constant 2146121005 : i32
    %47 = vector.broadcast %c2146121005_i32_6 : i32 to vector<8x128xi32>
    %48 = arith.muli %46, %47 : vector<8x128xi32>
    %c15_i32_7 = arith.constant 15 : i32
    %49 = vector.broadcast %c15_i32_7 : i32 to vector<8x128xi32>
    %50 = arith.shrsi %48, %49 : vector<8x128xi32>
    %c131071_i32_8 = arith.constant 131071 : i32
    %51 = vector.broadcast %c131071_i32_8 : i32 to vector<8x128xi32>
    %52 = arith.andi %50, %51 : vector<8x128xi32>
    %53 = arith.xori %48, %52 : vector<8x128xi32>
    %c-2073254261_i32_9 = arith.constant -2073254261 : i32
    %54 = vector.broadcast %c-2073254261_i32_9 : i32 to vector<8x128xi32>
    %55 = arith.muli %53, %54 : vector<8x128xi32>
    %c16_i32_10 = arith.constant 16 : i32
    %56 = vector.broadcast %c16_i32_10 : i32 to vector<8x128xi32>
    %57 = arith.shrsi %55, %56 : vector<8x128xi32>
    %c65535_i32_11 = arith.constant 65535 : i32
    %58 = vector.broadcast %c65535_i32_11 : i32 to vector<8x128xi32>
    %59 = arith.andi %57, %58 : vector<8x128xi32>
    %60 = arith.xori %55, %59 : vector<8x128xi32>
    %c9_i32_12 = arith.constant 9 : i32
    %61 = vector.broadcast %c9_i32_12 : i32 to vector<8x128xi32>
    %62 = arith.shrsi %60, %61 : vector<8x128xi32>
    %c8388607_i32_13 = arith.constant 8388607 : i32
    %63 = vector.broadcast %c8388607_i32_13 : i32 to vector<8x128xi32>
    %64 = arith.andi %62, %63 : vector<8x128xi32>
    %c1065353216_i32_14 = arith.constant 1065353216 : i32
    %65 = vector.broadcast %c1065353216_i32_14 : i32 to vector<8x128xi32>
    %66 = arith.ori %64, %65 : vector<8x128xi32>
    %67 = tpu.bitcast %66 : vector<8x128xi32> -> vector<8x128xf32>
    %cst_15 = arith.constant 1.000000e+00 : f32
    %68 = vector.broadcast %cst_15 : f32 to vector<8x128xf32>
    %69 = arith.subf %67, %68 : vector<8x128xf32>
    %70 = math.log %39 : vector<8x128xf32>
    %cst_16 = arith.constant -2.000000e-02 : f32
    %71 = vector.broadcast %cst_16 : f32 to vector<8x128xf32>
    %72 = arith.mulf %71, %70 : vector<8x128xf32>
    %73 = math.sqrt %72 : vector<8x128xf32>
    %cst_17 = arith.constant 6.28318548 : f32
    %74 = vector.broadcast %cst_17 : f32 to vector<8x128xf32>
    %75 = arith.mulf %74, %69 : vector<8x128xf32>
    %76 = math.cos %75 : vector<8x128xf32>
    %77 = arith.mulf %73, %76 : vector<8x128xf32>
    %78 = math.sin %75 : vector<8x128xf32>
    %79 = arith.mulf %73, %78 : vector<8x128xf32>
    %c0 = arith.constant 0 : index
    %c0_18 = arith.constant 0 : index
    %80 = vector.load %arg1[%c0, %c0_18] : memref<16x128xf32, #tpu.memory_space<vmem>>, vector<8x128xf32>
    %81 = arith.addf %80, %77 : vector<8x128xf32>
    %c0_19 = arith.constant 0 : index
    %c0_20 = arith.constant 0 : index
    %82 = vector.load %arg2[%c0_19, %c0_20] : memref<16x128xf32, #tpu.memory_space<vmem>>, vector<8x128xf32>
    tpu.vector_store %arg2[%c0_19, %c0_20], %81 {strides = array<i32>} : memref<16x128xf32, #tpu.memory_space<vmem>>, vector<8x128xf32>,
    %c8 = arith.constant 8 : index
    %c0_21 = arith.constant 0 : index
    %83 = vector.load %arg1[%c8, %c0_21] : memref<16x128xf32, #tpu.memory_space<vmem>>, vector<8x128xf32>
    %84 = arith.addf %83, %79 : vector<8x128xf32>
    %c8_22 = arith.constant 8 : index
    %c0_23 = arith.constant 0 : index
    %85 = vector.load %arg2[%c8_22, %c0_23] : memref<16x128xf32, #tpu.memory_space<vmem>>, vector<8x128xf32>
    tpu.vector_store %arg2[%c8_22, %c0_23], %84 {strides = array<i32>} : memref<16x128xf32, #tpu.memory_space<vmem>>, vector<8x128xf32>,
    return
  }
  func.func @transform_0(%arg0: i32) -> (i32, i32) {
    %c0_i32 = arith.constant 0 : i32
    %c0_i32_0 = arith.constant 0 : i32
    return %arg0, %c0_i32 : i32, i32
  }
  func.func @transform_1(%arg0: i32) -> (i32, i32) {
    %c0_i32 = arith.constant 0 : i32
    %c0_i32_0 = arith.constant 0 : i32
    return %arg0, %c0_i32 : i32, i32
  }
}

</mosaic_0001>

<bundles_post_ra>
// kernel: tpu_custom_call.1
= control target key start
LH: loop header
LB: loop body
LE: loop exit
PB: predicated region body
PF: predicated region fallthrough
CT: control target
= control target key end

     0   :  { %6 = vsyncpa [#allocation3], 0  ;;  %s472_s0 = inlined_call_operand.hbm [shape: f32[16,128], index: 0, kind: input, shape index: {}]   ;;  %s473_s1 = inlined_call_operand.hbm [shape: f32[16,128], index: 1, kind: output, shape index: {}]  }
   0x1   :  { %7 = vsyncpa [#allocation4], 0  ;;  %s398_s6 = smov [#allocation2]   ;;  %s350_s10 = scalar_lea.hbm %s472_s0, 256 }
   0x2   :  { %s13_s7 = sshll.u32 %s398_s6, 4  ;;  %p351_p0 = scmp.ne.s32.totalorder %s472_s0, %s350_s10  ;;  %s14_s7 = int_to_ptr.vmem [resolvable:$true] %s13_s7 }
   0x3   :  { %p354_p1 = scmp.lt.u32.totalorder %s350_s10, %s472_s0 }
   0x5   :  { %p356_p2 = pnand %p354_p1, %p351_p0 }
   0x7   :  { %359 = shalt.err (!%p356_p2)
}
   0x8   :  { %s360_s15 = scalar_lea.vmem %s14_s7, 256  ;;  %p365_p4 = scmp.lt.s32.totalorder %s14_s7, %s14_s7 }
   0x9   :  { %p361_p3 = scmp.ne.s32.totalorder %s14_s7, %s360_s15  ;;  %p366_p5 = scmp.lt.s32.totalorder %s360_s15, %s360_s15 }
   0xb   :  { %p367_p6 = por %p366_p5, %p365_p4 }
   0xd   :  { %p368_p7 = pnand %p367_p6, %p361_p3 }
   0xf   :  { %371 = shalt.err (!%p368_p7)
}
  0x10   :  { %s399_s16 = smov 128   ;;  %s400_s17 = smov 8  }
  0x11   :  { %19 = dma.hbm_to_vmem [thread:$0]  %s472_s0, 256, %s14_s7, [#allocation3], %s399_s16, %s399_s16, %s400_s17  }
  0x12   :  { %394 = dma.done.wait [#allocation3], 256  }
  0x13   :  { %395 = vsyncadd [#allocation3], 4294967040  ;;  %v24_v0 = vlaneseq  ;;  %v401_v35 = vmov 683565275   ;;  %v402_v37 = vmov 2475754826  }
  0x14   :  { %v403_v39 = vmov 2131351028   ;;  %v404_v44 = vmov 2102212464   ;;  %v405_v49 = vmov 920167782  }
  0x15   :  { %v25_v1 = vshrl.u32 %v24_v0, 7  ;;  %v27_v2 = vand.u32 127, %v24_v0  ;;  %v406_v55 = vmov 1326507024   ;;  %s407_s0 = smov [#allocation5]  }
  0x16   :  { %s298_s20 = sshll.u32 %s407_s0, 4  ;;  %s299_s20 = int_to_ptr.vmem [resolvable:$true] %s298_s20 }
  0x17   :  { %v30_v3 = vmul.u32 128, %v25_v1  ;;  %s372_s21 = scalar_lea.vmem %s299_s20, 256  ;;  %p377_p9 = scmp.lt.s32.totalorder %s299_s20, %s299_s20 }
  0x18   :  { %p373_p8 = scmp.ne.s32.totalorder %s299_s20, %s372_s21  ;;  %p378_p10 = scmp.lt.s32.totalorder %s372_s21, %s372_s21 }
  0x19   :  { %v31_v4 = vadd.s32 %v30_v3, %v27_v2 }
  0x1a   :  { %p379_p11 = por %p378_p10, %p377_p9 }
  0x1b   :  { %v50_v5 = vxor.u32 1780182007, %v31_v4  ;;  %v32_v11 = vxor.u32 760514605, %v31_v4 }
  0x1c   :  { %p380_p12 = pnand %p379_p11, %p373_p8 }
  0x1d   :  { %v315_v6 = vshrl.u32 %v50_v5, 16  ;;  %v310_v14 = vshrl.u32 %v32_v11, 16 }
  0x1f   :  { %v53_v7 = vxor.u32 %v315_v6, %v50_v5  ;;  %v35_v17 = vxor.u32 %v310_v14, %v32_v11 }
  0x21   :  { %v54_v8 = vmul.u32 2146121005, %v53_v7  ;;  %v36_v20 = vmul.u32 2146121005, %v35_v17 }
  0x23   :  { %v316_v9 = vshrl.u32 %v54_v8, 15  ;;  %v311_v23 = vshrl.u32 %v36_v20, 15 }
  0x25   :  { %v57_v10 = vxor.u32 %v316_v9, %v54_v8  ;;  %v39_v26 = vxor.u32 %v311_v23, %v36_v20 }
  0x27   :  { %v58_v12 = vmul.u32 2221713035, %v57_v10  ;;  %v40_v29 = vmul.u32 2221713035, %v39_v26 }
  0x29   :  { %v317_v13 = vshrl.u32 %v58_v12, 16  ;;  %v312_v41 = vshrl.u32 %v40_v29, 16 }
  0x2b   :  { %v61_v15 = vxor.u32 %v317_v13, %v58_v12  ;;  %v43_v57 = vxor.u32 %v312_v41, %v40_v29 }
  0x2d   :  { %v318_v16 = vshrl.u32 %v61_v15, 9  ;;  %v313_v5 = vshrl.u32 %v43_v57, 9 }
  0x2f   :  { %v64_v18 = vor.u32 1065353216, %v318_v16  ;;  %v46_v15 = vor.u32 1065353216, %v313_v5 }
  0x31   :  { %v319_v19 = vadd.f32 -1.0, %v64_v18 }
  0x33   :  { %v433_v21 = vmul.f32 6.2831855, %v319_v19  ;;  %v314_v19 = vadd.f32 -1.0, %v46_v15 }
  0x35   :  { %v81_v22 = vand.u32 2139095040, %v433_v21  ;;  %v78_v28 = vand.u32 2147483647, %v433_v21  ;;  %v49_v23 = vsub.f32 1.0, %v314_v19  ;;  %vm80_vm7 = vcmp.lt.s32.totalorder %v433_v21, 0 }
  0x37   :  { %v82_v24 = vshrl.u32 %v81_v22, 23  ;;  %v85_v32 = vand.u32 8388607, %v78_v28  ;;  %342 = vlog2.f32 %v49_v23  ;;  %vm79_vm8 = vcmp.le.f32.partialorder %v78_v28, 0.7853982 }
  0x39   :  { %v320_v25 = vadd.s32 4294967169, %v82_v24  ;;  %v86_v47 = vor.u32 8388608, %v85_v32 }
  0x3b   :  { %v88_v27 = vadd.s32 1, %v320_v25  ;;  %v126_v62 = vshll.u32 %v86_v47, 8 }
  0x3d   :  { %vm89_vm0 = vcmp.gt.s32.totalorder %v88_v27, 0 }
  0x3e   :  { %v90_v30 = vsel %vm89_vm0, %v88_v27, 0 }
  0x3f   :  { %v92_v31 = vand.u32 31, %v90_v30  ;;  %v91_v33 = vshrl.u32 %v90_v30, 5 }
  0x41   :  { %v93_v34 = vsub.s32 32, %v92_v31  ;;  %v95_v36 = vshll.u32 %v401_v35, %v92_v31  ;;  %v98_v38 = vshll.u32 %v402_v37, %v92_v31  ;;  %v101_v40 = vshll.u32 %v403_v39, %v92_v31  ;;  %v343_v32 = vpop.eup %342 }
  0x42   :  { %v104_v46 = vshll.u32 %v404_v44, %v92_v31  ;;  %v107_v50 = vshll.u32 %v405_v49, %v92_v31  ;;  %vm110_vm1 = vcmp.lt.s32.totalorder %v91_v33, 1  ;;  %vm113_vm2 = vcmp.lt.s32.totalorder %v91_v33, 4 }
  0x43   :  { %v96_v42 = vshrl.u32 %v402_v37, %v93_v34  ;;  %v99_v43 = vshrl.u32 %v403_v39, %v93_v34  ;;  %v102_v45 = vshrl.u32 %v404_v44, %v93_v34  ;;  %v94_v48 = vshrl.u32 %v401_v35, %v93_v34 }
  0x44   :  { %v105_v54 = vshrl.u32 %v405_v49, %v93_v34  ;;  %v108_v56 = vshrl.u32 %v406_v55, %v93_v34  ;;  %vm112_vm3 = vcmp.lt.s32.totalorder %v91_v33, 3  ;;  %vm111_vm4 = vcmp.lt.s32.totalorder %v91_v33, 2 }
  0x45   :  { %v97_v51 = vor.u32 %v96_v42, %v95_v36  ;;  %v100_v52 = vor.u32 %v99_v43, %v98_v38  ;;  %v103_v53 = vor.u32 %v102_v45, %v101_v40  ;;  %v68_v37 = vmul.f32 0.6931472, %v343_v32 }
  0x46   :  { %v106_v58 = vor.u32 %v105_v54, %v104_v46  ;;  %v109_v60 = vor.u32 %v108_v56, %v107_v50 }
  0x47   :  { %v115_v59 = vsel %vm113_vm2, %v103_v53, 2102212464  ;;  %v118_v61 = vsel %vm110_vm1, %v97_v51, %v100_v52  ;;  %v114_v63 = vsel %vm110_vm1, %v94_v48, %v97_v51  ;;  %v122_v2 = vsel %vm110_vm1, %v100_v52, %v103_v53 }
  0x48   :  { %v116_v0 = vsel %vm112_vm3, %v100_v52, %v115_v59  ;;  %v119_v1 = vsel %vm113_vm2, %v106_v58, 920167782  ;;  %v123_v4 = vsel %vm113_vm2, %v109_v60, 1326507024  ;;  %v69_v42 = vmul.f32 -0.02, %v68_v37 }
  0x49   :  { %v120_v3 = vsel %vm112_vm3, %v103_v53, %v119_v1  ;;  %v124_v7 = vsel %vm112_vm3, %v106_v58, %v123_v4  ;;  %v117_v8 = vsel %vm111_vm4, %v114_v63, %v116_v0  ;;  %vm170_vm1 = vweird.f32 %v433_v21 }
  0x4a   :  { %v121_v6 = vsel %vm111_vm4, %v118_v61, %v120_v3  ;;  %v125_v9 = vsel %vm111_vm4, %v122_v2, %v124_v7  ;;  %v133_v14 = vmul.u32 %v126_v62, %v117_v8  ;;  %344 = vrsqrt.f32 %v69_v42  ;;  %v287_v7 = vld [vmem:[#allocation2] sm:$0xff] }
  0x4b   :  { %v442_v10 = vmul.u32.u64.low %v126_v62, %v121_v6  ;;  %v443_v11 = vmul.u32.u64.high %v126_v62, %v121_v6, %v442_v10  ;;  %v445_v12 = vmul.u32.u64.low %v126_v62, %v125_v9  ;;  %v446_v13 = vmul.u32.u64.high %v126_v62, %v125_v9, %v445_v12  ;;  %v290_v9 = vld [vmem:[#allocation2 + $0x8] sm:$0xff] }
  0x4c   :  { %vm72_vm9 = vcmp.eq.f32.partialorder %v69_v42, inf  ;;  %vm74_vm10 = vcmp.eq.f32.partialorder %v69_v42, 0.0  ;;  %v75_v59 = vand.u32 2147483648, %v69_v42 }
  0x4d   :  { %v136_v16 = vadd.s32 1, %v443_v11  ;;  %vm135_vm5 = vc.u32 %v446_v13, %v442_v10  ;;  %v134_v31 = vadd.s32 %v442_v10, %v446_v13 }
  0x4f   :  { %v137_v17 = vsel %vm135_vm5, %v136_v16, %v443_v11 }
  0x50   :  { %v138_v18 = vadd.s32 %v137_v17, %v133_v14 }
  0x52   :  { %v139_v20 = vadd.s32 536870912, %v138_v18 }
  0x54   :  { %v140_v22 = vshrl.u32 %v139_v20, 30  ;;  %v345_v54 = vpop.eup %344 }
  0x55   :  { %v71_v57 = vmul.f32 %v345_v54, %v69_v42 }
  0x56   :  { %v141_v24 = vshll.u32 %v140_v22, 30  ;;  %v164_v46 = vsub.s32 4, %v140_v22 }
  0x57   :  { %v73_v60 = vsel %vm72_vm9, %v69_v42, %v71_v57 }
  0x58   :  { %v142_v25 = vsub.s32 %v138_v18, %v141_v24  ;;  %v165_v49 = vsel %vm80_vm7, %v164_v46, %v140_v22  ;;  %v76_v1 = vsel %vm74_vm10, %v75_v59, %v73_v60 }
  0x59   :  { %v167_v52 = vsel %vm79_vm8, 0, %v165_v49 }
  0x5a   :  { %v144_v26 = vsub.s32 0, %v142_v25  ;;  %v275_v53 = vadd.s32 3, %v167_v52  ;;  %v171_v55 = vand.u32 3, %v167_v52 }
  0x5c   :  { %v321_v27 = vmin.u32 %v144_v26, %v142_v25  ;;  %v276_v56 = vand.u32 3, %v275_v53  ;;  %vm176_vm11 = vcmp.eq.s32.totalorder %v171_v55, 2  ;;  %vm173_vm13 = vcmp.eq.s32.totalorder %v171_v55, 0 }
  0x5d   :  { %vm172_vm15 = vcmp.lt.s32.totalorder %v171_v55, 2 }
  0x5e   :  { %v146_v29 = vclz %v321_v27  ;;  %vm281_vm12 = vcmp.eq.s32.totalorder %v276_v56, 2  ;;  %vm278_vm14 = vcmp.eq.s32.totalorder %v276_v56, 0  ;;  %vm277_vm0 = vcmp.lt.s32.totalorder %v276_v56, 2 }
  0x60   :  { %v322_v30 = vadd.s32 4294967294, %v146_v29 }
  0x62   :  { %vm323_vm6 = vcmp.lt.s32.totalorder %v322_v30, 0 }
  0x63   :  { %v149_v33 = vsel %vm323_vm6, 0, %v322_v30 }
  0x64   :  { %v150_v34 = vsub.s32 32, %v149_v33  ;;  %v151_v35 = vshll.u32 %v142_v25, %v149_v33  ;;  %v154_v36 = vsub.s32 4294967266, %v149_v33 }
  0x66   :  { %v152_v38 = vshrl.u32 %v134_v31, %v150_v34  ;;  %v155_v39 = vadd.s32 127, %v154_v36 }
  0x68   :  { %v153_v40 = vor.u32 %v152_v38, %v151_v35  ;;  %v156_v41 = vshll.u32 %v155_v39, 23 }
  0x6a   :  { %v157_v43 = vor.u32 4788187, %v156_v41  ;;  %v160_v44 = vcvt.s32.f32 %v153_v40 }
  0x6c   :  { %v158_v45 = vand.u32 2147483647, %v157_v43 }
  0x6e   :  { %v161_v47 = vmul.f32 %v160_v44, %v158_v45 }
  0x70   :  { %v162_v48 = vxor.u32 2147483648, %v161_v47 }
  0x72   :  { %v163_v50 = vsel %vm80_vm7, %v162_v48, %v161_v47 }
  0x73   :  { %v166_v51 = vsel %vm79_vm8, %v433_v21, %v163_v50 }
  0x74   :  { %346 = vcosq.f32 %v166_v51 }
  0x75   :  { %348 = vsinq.f32 %v166_v51 }
  0x7e   :  { %v347_v58 = vpop.eup %346 }
  0x7f   :  { %v349_v28 = vpop.eup %348  ;;  %v177_v61 = vxor.u32 2147483648, %v347_v58 }
  0x80   :  { %v174_v62 = vxor.u32 2147483648, %v349_v28 }
  0x81   :  { %v178_v63 = vsel %vm176_vm11, %v177_v61, %v349_v28  ;;  %v283_v0 = vsel %vm281_vm12, %v177_v61, %v349_v28 }
  0x82   :  { %v175_v2 = vsel %vm173_vm13, %v347_v58, %v174_v62  ;;  %v280_v3 = vsel %vm278_vm14, %v347_v58, %v174_v62 }
  0x83   :  { %v179_v4 = vsel %vm172_vm15, %v175_v2, %v178_v63  ;;  %v284_v5 = vsel %vm277_vm0, %v280_v3, %v283_v0 }
  0x84   :  { %v180_v6 = vsel %vm170_vm1, nan, %v179_v4  ;;  %v285_v8 = vsel %vm170_vm1, nan, %v284_v5 }
  0x85   :  { %v181_v10 = vmul.f32 %v180_v6, %v76_v1  ;;  %v286_v11 = vmul.f32 %v285_v8, %v76_v1 }
  0x87   :  { %v288_v12 = vadd.f32 %v287_v7, %v181_v10  ;;  %v291_v13 = vadd.f32 %v290_v9, %v286_v11 }
  0x89   :  { %289 = vst [vmem:[#allocation5] sm:$0xff] %v288_v12  ;;  %292 = vst [vmem:[#allocation5 + $0x8] sm:$0xff] %v291_v13 }
  0x8a   :  { %383 = shalt.err (!%p380_p12)
}
  0x8b   :  { %s384_s24 = scalar_lea.hbm %s473_s1, 256 }
  0x8c   :  { %p385_p13 = scmp.ne.s32.totalorder %s473_s1, %s384_s24  ;;  %p388_p0 = scmp.lt.u32.totalorder %s384_s24, %s473_s1 }
  0x8e   :  { %p390_p1 = pnand %p388_p0, %p385_p13 }
  0x90   :  { %393 = shalt.err (!%p390_p1)
}
  0x91   :  { %304 = dma.vmem_to_hbm [thread:$0]  %s299_s20, 256, %s473_s1, [#allocation4], %s399_s16, %s399_s16, %s400_s17  }
  0x92   :  { %396 = dma.done.wait [#allocation4], 256  }
  0x93   :  { %397 = vsyncadd [#allocation4], 4294967040 }
  0x94   :  { %308 = vsyncpa [#allocation3], 1 }
  0x95   :  { %309 = vsyncpa [#allocation4], 1 }

</bundles_post_ra>
